<compile_context>
chip_gen: v7x
topology: tpu7x:2x2x1
jax: 0.10.0
libtpu: 0.0.40
codegen_flags: <defaults>
</compile_context>

<pallas_src>
import jax
import jax.numpy as jnp
from jax.experimental import pallas as pl
from jax.experimental.pallas import tpu as pltpu


def _make_kernel(nb):
    """Kernel over one (nb, L, td) block: trend matmul + residual, per batch row."""

    def kernel(a_ref, x_ref, xs_ref, xt_ref):
        a = a_ref[...]                                   # (L, L), matmul-operand dtype
        for b in range(nb):                              # static unroll (nb <= 16)
            xb = x_ref[b]                                # (L, td), input dtype
            x_t = jnp.dot(a, xb, preferred_element_type=jnp.float32)   # MXU, f32 acc
            xt_ref[b] = x_t.astype(xt_ref.dtype)
            xs_ref[b] = (xb.astype(jnp.float32) - x_t).astype(xs_ref.dtype)

    return kernel


def _build_avg_matrix(seq_len, len_window):
    # Row t averages x[lo:hi+1] with lo/hi clipped to the sequence, matching
    # AvgPool1d(kernel=len_window, stride=1, padding=(len_window-1)//2,
    # count_include_pad=False).
    p = (len_window - 1) // 2
    t = jnp.arange(seq_len)[:, None]
    j = jnp.arange(seq_len)[None, :]
    lo = jnp.maximum(t - p, 0)
    hi = jnp.minimum(t - p + len_window - 1, seq_len - 1)
    in_window = (j >= lo) & (j <= hi)
    count = (hi - lo + 1).astype(jnp.float32)
    return in_window.astype(jnp.float32) / count         # (L, L) f32


# Conservative block budget that fits every generation's scoped VMEM once the
# limit is raised (v5e default 16 MiB, v6e 32/128 MiB, v7x 32/64 MiB).
_VMEM_BUDGET = 28 * 1024 * 1024


def _choose_tiles(L, n_lanes, n_batch, x_item, out_item, a_bytes):
    """Pick (nb, td): lane tile as wide as the budget allows, then group batches."""

    def blocks_bytes(nb, td):
        # x block + 2 output blocks, each double-buffered by the pipeline.
        return 2 * nb * L * td * (x_item + 2 * out_item)

    if n_lanes % 128 == 0:
        divisors = [d for d in range(128, n_lanes + 1, 128) if n_lanes % d == 0]
        td = divisors[0]
        for d in reversed(divisors):                      # largest lane tile that fits
            if a_bytes + blocks_bytes(1, d) <= _VMEM_BUDGET:
                td = d
                break
    else:
        td = n_lanes                                      # short lane axis: take it whole

    nb = 1
    for cand in range(2, n_batch + 1):
        if cand > 16:                                     # bound kernel unroll
            break
        if n_batch % cand:
            continue
        if cand * L * td * x_item > (4 << 20):            # target ~1-4 MiB x blocks
            break
        if a_bytes + blocks_bytes(cand, td) > _VMEM_BUDGET:
            break
        nb = cand
    return nb, td


def series_decomposition(x, len_window):
    """x: (B, L, D) -> (x_s, x_t), each (B, L, D)."""
    assert len_window % 2 == 1, (
        "len_window must be odd: with an even window PyTorch AvgPool1d returns "
        "length L-1 and the residual subtraction in the reference module fails.")
    B, L, D = x.shape
    out_dtype = x.dtype

    # bf16 inputs: keep operands in bf16 (native single-pass MXU mode), f32 accum.
    op_dtype = jnp.bfloat16 if x.dtype == jnp.bfloat16 else jnp.float32
    a = _build_avg_matrix(L, len_window).astype(op_dtype)

    # Narrow channel counts -> fold batch into the lane dimension so kernel
    # stores are lane-dense (the moving average is identical per column, so
    # concatenating (b, d) columns along lanes is mathematically free).
    fold = (D < 128) and (B > 1)
    if fold:
        x_in = jnp.transpose(x, (1, 0, 2)).reshape(1, L, B * D)
    else:
        x_in = x
    n_batch, _, n_lanes = x_in.shape

    x_item = jnp.dtype(x.dtype).itemsize
    out_item = jnp.dtype(out_dtype).itemsize
    a_item = jnp.dtype(op_dtype).itemsize
    a_bytes = L * L * a_item                              # single-buffered A

    nb, td = _choose_tiles(L, n_lanes, n_batch, x_item, out_item, a_bytes)

    n_b_tiles = n_batch // nb
    n_d_tiles = n_lanes // td
    # v7x megacore: put the larger parallel axis first so both TCs get work.
    if n_d_tiles >= n_b_tiles:
        grid = (n_d_tiles, n_b_tiles)
        x_map = lambda d, b: (b, 0, d)
    else:
        grid = (n_b_tiles, n_d_tiles)
        x_map = lambda b, d: (b, 0, d)

    # A: constant block index -> fetched once, kept VMEM-resident; single-buffer
    # it so it does not double its VMEM footprint (2*L^2 would not fit v7x at
    # large L and blows v5e's scoped default).
    a_spec = pl.BlockSpec((L, L), lambda i, j: (0, 0), pipeline_mode=pl.Buffered(1))
    x_spec = pl.BlockSpec((nb, L, td), x_map)

    out_shape = (jax.ShapeDtypeStruct(x_in.shape, out_dtype),
                 jax.ShapeDtypeStruct(x_in.shape, out_dtype))

    # Advisory cost: read x once, write x_s and x_t; A is fetched once.
    flops = 2 * B * L * L * D + B * L * D
    bytes_accessed = x_item * B * L * D + out_item * 2 * B * L * D + a_item * L * L

    est_vmem = a_bytes + 2 * nb * L * td * (x_item + 2 * out_item)
    vmem_limit = int(min(max(34 << 20, int(est_vmem * 1.5)), 120 << 20))

    xs, xt = pl.pallas_call(
        _make_kernel(nb),
        out_shape=out_shape,
        grid=grid,
        in_specs=[a_spec, x_spec],
        out_specs=(x_spec, x_spec),
        compiler_params=pltpu.CompilerParams(
            dimension_semantics=("parallel", "parallel"),
            vmem_limit_bytes=vmem_limit,
        ),
        cost_estimate=pl.CostEstimate(
            flops=flops, transcendentals=0, bytes_accessed=bytes_accessed),
    )(a, x_in)

    if fold:
        xs = jnp.transpose(xs.reshape(L, B, D), (1, 0, 2))
        xt = jnp.transpose(xt.reshape(L, B, D), (1, 0, 2))
    return xs, xt


def series_decomposition_ref(x, len_window):
    # Independent pure-JAX reference (explicit window loop, clipped means).
    B, L, D = x.shape
    p = (len_window - 1) // 2
    rows = []
    for t in range(L):
        lo = max(t - p, 0)
        hi = min(t + p, L - 1)
        rows.append(jnp.mean(x[:, lo:hi + 1, :], axis=1))
    x_t = jnp.stack(rows, axis=1)
    return x - x_t, x_t


if __name__ == "__main__":
    key = jax.random.PRNGKey(0)

    # Case 1: small-D fold path (D < 128 -> batch folded into lanes), f32.
    B, L, D = 2, 16, 32
    len_window = 5
    x = jax.random.normal(key, (B, L, D), jnp.float32)
    x_s, x_t = series_decomposition(x, len_window)
    x_s = jax.block_until_ready(x_s)
    x_t = jax.block_until_ready(x_t)
    xs_ref, xt_ref = series_decomposition_ref(x, len_window)
    assert x_s.shape == (B, L, D) and x_t.shape == (B, L, D)
    assert jnp.allclose(x_t, xt_ref, atol=1e-5, rtol=1e-5)
    assert jnp.allclose(x_s, xs_ref, atol=1e-5, rtol=1e-5)

    # Case 2: lane-dense direct path with batch grouping (D multiple of 128), f32.
    B2, L2, D2 = 4, 24, 128
    x2 = jax.random.normal(jax.random.PRNGKey(1), (B2, L2, D2), jnp.float32)
    xs2, xt2 = series_decomposition(x2, 7)
    xs2 = jax.block_until_ready(xs2)
    xt2 = jax.block_until_ready(xt2)
    xs2_ref, xt2_ref = series_decomposition_ref(x2, 7)
    assert jnp.allclose(xt2, xt2_ref, atol=1e-5, rtol=1e-5)
    assert jnp.allclose(xs2, xs2_ref, atol=1e-5, rtol=1e-5)

    # Case 3: bf16 operands (native single-pass MXU mode, f32 accumulation).
    xb = x.astype(jnp.bfloat16)
    xs3, xt3 = series_decomposition(xb, len_window)
    xs3 = jax.block_until_ready(xs3)
    xt3 = jax.block_until_ready(xt3)
    xs3_ref, xt3_ref = series_decomposition_ref(xb, len_window)
    assert xs3.dtype == jnp.bfloat16 and xt3.dtype == jnp.bfloat16
    assert jnp.allclose(xt3.astype(jnp.float32), xt3_ref.astype(jnp.float32),
                        atol=5e-2, rtol=5e-2)
    assert jnp.allclose(xs3.astype(jnp.float32), xs3_ref.astype(jnp.float32),
                        atol=5e-2, rtol=5e-2)

    print("KERNEL_OK")
</pallas_src>

<mosaic_0001>
module attributes {stable_mosaic.version = 11 : i64} {
  func.func @kernel(%arg0: i32, %arg1: i32, %arg2: memref<16x16xf32, #tpu.memory_space<vmem>>, %arg3: memref<1x16x64xf32, #tpu.memory_space<vmem>>, %arg4: memref<1x16x64xf32, #tpu.memory_space<vmem>>, %arg5: memref<1x16x64xf32, #tpu.memory_space<vmem>>) attributes {dimension_semantics = [#tpu.dimension_semantics<parallel>, #tpu.dimension_semantics<parallel>], iteration_bounds = array<i64: 1, 1>, scalar_prefetch = 0 : i64, scratch_operands = 0 : i64, tpu.core_type = #tpu.core_type<tc>, window_params = [{pipeline_mode = #tpu.pipeline_mode<synchronous>, transform_indices = @transform_0, window_bounds = array<i64: 16, 16>}, {transform_indices = @transform_1, window_bounds = array<i64: 1, 16, 64>}, {transform_indices = @transform_2, window_bounds = array<i64: 1, 16, 64>}, {transform_indices = @transform_3, window_bounds = array<i64: 1, 16, 64>}]} {
    %c0 = arith.constant 0 : index
    %c0_0 = arith.constant 0 : index
    %0 = vector.load %arg2[%c0, %c0_0] : memref<16x16xf32, #tpu.memory_space<vmem>>, vector<16x16xf32>
    %c0_1 = arith.constant 0 : index
    %c0_2 = arith.constant 0 : index
    %c0_3 = arith.constant 0 : index
    %1 = vector.load %arg3[%c0_1, %c0_2, %c0_3] : memref<1x16x64xf32, #tpu.memory_space<vmem>>, vector<1x16x64xf32>
    %2 = vector.shape_cast %1 : vector<1x16x64xf32> to vector<16x64xf32>
    %cst = arith.constant dense<0.000000e+00> : vector<16x64xf32>
    %3 = tpu.matmul %0, %2, %cst {dimension_numbers = #tpu.dot_dimension_numbers<[1], [0], [0], [1], [0, 0, 1, 1], [], []>} : vector<16x16xf32>, vector<16x64xf32>, vector<16x64xf32> -> vector<16x64xf32>
    %c0_4 = arith.constant 0 : index
    %c0_5 = arith.constant 0 : index
    %c0_6 = arith.constant 0 : index
    %4 = vector.load %arg5[%c0_4, %c0_5, %c0_6] : memref<1x16x64xf32, #tpu.memory_space<vmem>>, vector<1x16x64xf32>
    %5 = vector.shape_cast %4 : vector<1x16x64xf32> to vector<16x64xf32>
    %6 = vector.shape_cast %3 : vector<16x64xf32> to vector<1x16x64xf32>
    tpu.vector_store %arg5[%c0_4, %c0_5, %c0_6], %6 {strides = array<i32>} : memref<1x16x64xf32, #tpu.memory_space<vmem>>, vector<1x16x64xf32>,
    %7 = arith.subf %2, %3 : vector<16x64xf32>
    %c0_7 = arith.constant 0 : index
    %c0_8 = arith.constant 0 : index
    %c0_9 = arith.constant 0 : index
    %8 = vector.load %arg4[%c0_7, %c0_8, %c0_9] : memref<1x16x64xf32, #tpu.memory_space<vmem>>, vector<1x16x64xf32>
    %9 = vector.shape_cast %8 : vector<1x16x64xf32> to vector<16x64xf32>
    %10 = vector.shape_cast %7 : vector<16x64xf32> to vector<1x16x64xf32>
    tpu.vector_store %arg4[%c0_7, %c0_8, %c0_9], %10 {strides = array<i32>} : memref<1x16x64xf32, #tpu.memory_space<vmem>>, vector<1x16x64xf32>,
    return
  }
  func.func @transform_0(%arg0: i32, %arg1: i32) -> (i32, i32) {
    %c0_i32 = arith.constant 0 : i32
    %c0_i32_0 = arith.constant 0 : i32
    %c0_i32_1 = arith.constant 0 : i32
    return %c0_i32, %c0_i32_0 : i32, i32
  }
  func.func @transform_1(%arg0: i32, %arg1: i32) -> (i32, i32, i32) {
    %c0_i32 = arith.constant 0 : i32
    %c0_i32_0 = arith.constant 0 : i32
    return %arg1, %c0_i32, %arg0 : i32, i32, i32
  }
  func.func @transform_2(%arg0: i32, %arg1: i32) -> (i32, i32, i32) {
    %c0_i32 = arith.constant 0 : i32
    %c0_i32_0 = arith.constant 0 : i32
    return %arg1, %c0_i32, %arg0 : i32, i32, i32
  }
  func.func @transform_3(%arg0: i32, %arg1: i32) -> (i32, i32, i32) {
    %c0_i32 = arith.constant 0 : i32
    %c0_i32_0 = arith.constant 0 : i32
    return %arg1, %c0_i32, %arg0 : i32, i32, i32
  }
}

</mosaic_0001>

<bundles_post_ra>
// kernel: tpu_custom_call.1
= control target key start
LH: loop header
LB: loop body
LE: loop exit
PB: predicated region body
PF: predicated region fallthrough
CT: control target
= control target key end

     0   :  { %9 = vsyncpa [#allocation3], 0  ;;  %s386_s0 = inlined_call_operand.hbm [shape: f32[16,16], index: 0, kind: input, shape index: {}]   ;;  %s387_s1 = inlined_call_operand.hbm [shape: f32[1,16,64], index: 1, kind: input, shape index: {}]   ;;  %s388_s2 = inlined_call_operand.hbm [shape: f32[1,16,64], index: 2, kind: output, shape index: {0}]   ;;  %s389_s3 = inlined_call_operand.hbm [shape: f32[1,16,64], index: 3, kind: output, shape index: {1}]  }
   0x1   :  { %10 = vsyncpa [#allocation6], 0 }
   0x2   :  { %11 = vsyncpa [#allocation4], 0 }
   0x3   :  { %12 = vsyncpa [#allocation9], 0  ;;  %s289_s12 = smov [#allocation2]   ;;  %s193_s16 = scalar_lea.hbm %s386_s0, 256 }
   0x4   :  { %s18_s13 = sshll.u32 %s289_s12, 4  ;;  %p194_p0 = scmp.ne.s32.totalorder %s386_s0, %s193_s16  ;;  %s19_s13 = int_to_ptr.vmem [resolvable:$true] %s18_s13 }
   0x5   :  { %p197_p1 = scmp.lt.u32.totalorder %s193_s16, %s386_s0 }
   0x7   :  { %p199_p2 = pnand %p197_p1, %p194_p0 }
   0x9   :  { %202 = shalt.err (!%p199_p2)
}
   0xa   :  { %s203_s21 = scalar_lea.vmem %s19_s13, 256  ;;  %p208_p4 = scmp.lt.s32.totalorder %s19_s13, %s19_s13 }
   0xb   :  { %p204_p3 = scmp.ne.s32.totalorder %s19_s13, %s203_s21  ;;  %p209_p5 = scmp.lt.s32.totalorder %s203_s21, %s203_s21 }
   0xd   :  { %p210_p6 = por %p209_p5, %p208_p4 }
   0xf   :  { %p211_p7 = pnand %p210_p6, %p204_p3 }
  0x11   :  { %214 = shalt.err (!%p211_p7)
}
  0x12   :  { %s290_s22 = smov 128   ;;  %s291_s23 = smov 8  }
  0x13   :  { %24 = dma.hbm_to_vmem [thread:$0]  %s386_s0, 256, %s19_s13, [#allocation3], %s290_s22, %s290_s22, %s291_s23  }
  0x14   :  { %s292_s26 = smov [#allocation5]   ;;  %s215_s30 = scalar_lea.hbm %s387_s1, 256 }
  0x15   :  { %s30_s27 = sshll.u32 %s292_s26, 4  ;;  %p216_p8 = scmp.ne.s32.totalorder %s387_s1, %s215_s30  ;;  %s31_s27 = int_to_ptr.vmem [resolvable:$true] %s30_s27 }
  0x16   :  { %p219_p9 = scmp.lt.u32.totalorder %s215_s30, %s387_s1 }
  0x18   :  { %p221_p10 = pnand %p219_p9, %p216_p8 }
  0x1a   :  { %224 = shalt.err (!%p221_p10)
}
  0x1b   :  { %s225_s8 = scalar_lea.vmem %s31_s27, 256  ;;  %p230_p12 = scmp.lt.s32.totalorder %s31_s27, %s31_s27 }
  0x1c   :  { %p226_p11 = scmp.ne.s32.totalorder %s31_s27, %s225_s8  ;;  %p231_p13 = scmp.lt.s32.totalorder %s225_s8, %s225_s8 }
  0x1e   :  { %p232_p0 = por %p231_p13, %p230_p12 }
  0x20   :  { %p233_p1 = pnand %p232_p0, %p226_p11 }
  0x22   :  { %236 = shalt.err (!%p233_p1)
}
  0x23   :  { %36 = dma.hbm_to_vmem [thread:$0]  %s387_s1, 256, %s31_s27, [#allocation6], %s290_s22, %s290_s22, %s291_s23  }
  0x24   :  { %281 = dma.done.wait [#allocation3], 256  }
  0x25   :  { %282 = vsyncadd [#allocation3], 4294967040 }
  0x26   :  { %283 = dma.done.wait [#allocation6], 256  }
  0x27   :  { %284 = vsyncadd [#allocation6], 4294967040  ;;  %vm47_vm0 = vcmask 130048   ;;  %v45_v0 = vld [vmem:[#allocation5] sm:$0xff]  ;;  %v46_v1 = vld [vmem:[#allocation5 + $0x8] sm:$0xff]  ;;  %s293_s10 = smov [#allocation8]  }
  0x28   :  { %v43_v2 = vld [vmem:[#allocation2] sm:$0xff]  ;;  %v183_v3 = vpack.c.bf16 %v46_v1, %v45_v0  ;;  %v44_v4 = vld [vmem:[#allocation2 + $0x8] sm:$0xff]  ;;  %s153_s11 = sshll.u32 %s293_s10, 4  ;;  %vm129_vm1 = vcmask 523264   ;;  %s294_s12 = smov [#allocation7]   ;;  %s154_s11 = int_to_ptr.vmem [resolvable:$true] %s153_s11 }
  0x29   :  { %180 = vmatprep.mubr.msk.f32.mxu0 %vm47_vm0, %v43_v2  ;;  %s141_s13 = sshll.u32 %s294_s12, 4  ;;  %s237_s1 = scalar_lea.vmem %s154_s11, 256  ;;  %s347_s13 = int_to_ptr.vmem [resolvable:$true] %s141_s13 }
  0x2a   :  { %184 = vmatprep.subr.bf16.mxu0 %v183_v3  ;;  %p238_p2 = scmp.ne.s32.totalorder %s154_s11, %s237_s1  ;;  %p242_p3 = scmp.lt.s32.totalorder %s154_s11, %s154_s11 }
  0x2b   :  { %186 = vmatpush3.bf16.msra.mxu0 %v183_v3  ;;  %p243_p4 = scmp.lt.s32.totalorder %s237_s1, %s237_s1 }
  0x2d   :  { %p244_p5 = por %p243_p4, %p242_p3 }
  0x2e   :  { %181 = vmatmul.mubr.msk.f32.vlgmr.msra.gmra.mrb[0].mxu0 %vm47_vm0, %v44_v4 }
  0x2f   :  { %p245_p6 = pnand %p244_p5, %p238_p2 }
 0x101   :  { %v182_v5 = vpop.f32.mrb[0].mxu0 }
 0x102   :  { %131 = vst.msk [vmem:[#allocation8 + $0x8] sm:$0xff] %vm129_vm1, %v182_v5  ;;  %v133_v6 = vsub.f32 %v46_v1, %v182_v5  ;;  %v120_v7 = vpop.f32.mrb[1].mxu0 }
 0x103   :  { %130 = vst.msk [vmem:[#allocation8] sm:$0xff] %vm129_vm1, %v120_v7  ;;  %v132_v8 = vsub.f32 %v45_v0, %v120_v7 }
 0x104   :  { %135 = vst.msk [vmem:[#allocation7 + $0x8] sm:$0xff] %vm129_vm1, %v133_v6 }
 0x105   :  { %248 = shalt.err (!%p245_p6)
}
 0x106   :  { %s249_s16 = scalar_lea.hbm %s389_s3, 256 }
 0x107   :  { %p250_p7 = scmp.ne.s32.totalorder %s389_s3, %s249_s16  ;;  %p253_p8 = scmp.lt.u32.totalorder %s249_s16, %s389_s3 }
 0x109   :  { %p255_p9 = pnand %p253_p8, %p250_p7 }
 0x10b   :  { %258 = shalt.err (!%p255_p9)
}
 0x10c   :  { %159 = dma.vmem_to_hbm [thread:$0]  %s154_s11, 256, %s389_s3, [#allocation9], %s290_s22, %s290_s22, %s291_s23   ;;  %134 = vst.msk [vmem:[#allocation7] sm:$0xff] %vm129_vm1, %v132_v8 }
 0x10d   :  { %s259_s25 = scalar_lea.vmem %s347_s13, 256  ;;  %p264_p11 = scmp.lt.s32.totalorder %s347_s13, %s347_s13 }
 0x10e   :  { %p260_p10 = scmp.ne.s32.totalorder %s347_s13, %s259_s25  ;;  %p265_p12 = scmp.lt.s32.totalorder %s259_s25, %s259_s25 }
 0x110   :  { %p266_p13 = por %p265_p12, %p264_p11 }
 0x112   :  { %p267_p0 = pnand %p266_p13, %p260_p10 }
 0x114   :  { %270 = shalt.err (!%p267_p0)
}
 0x115   :  { %s271_s28 = scalar_lea.hbm %s388_s2, 256 }
 0x116   :  { %p272_p1 = scmp.ne.s32.totalorder %s388_s2, %s271_s28  ;;  %p275_p2 = scmp.lt.u32.totalorder %s271_s28, %s388_s2 }
 0x118   :  { %p277_p3 = pnand %p275_p2, %p272_p1 }
 0x11a   :  { %280 = shalt.err (!%p277_p3)
}
 0x11b   :  { %147 = dma.vmem_to_hbm [thread:$0]  %s347_s13, 256, %s388_s2, [#allocation4], %s290_s22, %s290_s22, %s291_s23  }
 0x11c   :  { %285 = dma.done.wait [#allocation4], 256  }
 0x11d   :  { %286 = vsyncadd [#allocation4], 4294967040 }
 0x11e   :  { %287 = dma.done.wait [#allocation9], 256  }
 0x11f   :  { %288 = vsyncadd [#allocation9], 4294967040 }
 0x120   :  { %166 = vsyncpa [#allocation3], 1 }
 0x121   :  { %167 = vsyncpa [#allocation6], 1 }
 0x122   :  { %168 = vsyncpa [#allocation4], 1 }
 0x123   :  { %169 = vsyncpa [#allocation9], 1 }

</bundles_post_ra>
